<compile_context>
chip_gen: v7x
topology: tpu7x:2x2x1
jax: 0.10.0
libtpu: 0.0.40
codegen_flags: <defaults>
</compile_context>

<pallas_src>
import jax
import jax.numpy as jnp
from jax import lax
from jax.experimental import pallas as pl
from jax.experimental.pallas import tpu as pltpu


def squeeze_block_kernel(x_ref, w1_ref, w2_ref, b1_ref, a1_ref, b2_ref,
                         a2_ref, o_ref):
    x = x_ref[...]                                              # (Bt, C, HW)
    hw = x.shape[-1]

    # Squeeze: global average pool over H*W (lane reduce, f32 accumulation).
    pooled = jnp.sum(x.astype(jnp.float32), axis=-1) * (1.0 / hw)   # (Bt, C)

    # Excitation MLP, batched over Bt.  Contraction sizes (C, M) are tiny, so
    # broadcast-FMA + last-axis reduce is exact f32 and off the critical path.
    # h[b, m] = sum_c pooled[b, c] * w1[m, c] + b1[m]
    h = jnp.sum(pooled[:, None, :] * w1_ref[...][None, :, :], axis=-1)
    h = h + b1_ref[...]                                         # (Bt, M)
    h = jnp.where(h > 0, h, h * a1_ref[...])                    # PReLU(M)
    # s[b, c] = sum_m h[b, m] * w2[c, m] + b2[c]
    s = jnp.sum(h[:, None, :] * w2_ref[...][None, :, :], axis=-1)
    s = s + b2_ref[...]                                         # (Bt, C)
    s = jnp.where(s > 0, s, s * a2_ref[...])                    # PReLU(C)

    # Scale: per-(batch, channel) gate broadcast over the HW lane axis.
    o_ref[...] = (x * s.astype(x.dtype)[:, :, None]).astype(o_ref.dtype)


def _choose_block_batch(B, C, HW, itemsize):
    """Pick how many images share one grid step."""
    per_image = C * HW * itemsize
    # ~2 MiB blocks sit on the measured ~85% HBM-roofline plateau; in+out
    # double-buffering means ~4x block lives in VMEM, well inside the 32 MiB
    # scoped limit set below.
    bt = max(1, (2 << 20) // per_image)
    bt = min(bt, B)
    if B >= 2:
        # Keep >= 2 grid steps so the "parallel" axis can feed both v7x TCs.
        bt = min(bt, max(1, B // 2))
    while B % bt != 0:          # avoid a ragged trailing block
        bt -= 1
    return bt


def squeeze_block_forward(x_nchw, params, block_batch=None):
    """x_nchw: (B, C, H, W); params: w1 (M,C), b1/a1 (M,), w2 (C,M), b2/a2 (C,)."""
    B, C, H, W = x_nchw.shape
    HW = H * W
    w1, b1, a1 = params["w1"], params["b1"], params["a1"]
    w2, b2, a2 = params["w2"], params["b2"], params["a2"]
    M = w1.shape[0]
    assert w1.shape == (M, C) and w2.shape == (C, M)
    assert b1.shape == (M,) and a1.shape == (M,)
    assert b2.shape == (C,) and a2.shape == (C,)

    Bt = block_batch if block_batch is not None else _choose_block_batch(
        B, C, HW, x_nchw.dtype.itemsize)
    assert B % Bt == 0

    # Free view change (contiguous trailing dims) -- no pad, no transpose.
    # For best store bandwidth H*W should be a 128-multiple (unmasked vst);
    # other sizes remain correct (masked stores).
    x = x_nchw.reshape(B, C, HW)

    out = pl.pallas_call(
        squeeze_block_kernel,
        out_shape=jax.ShapeDtypeStruct((B, C, HW), x.dtype),
        grid_spec=pltpu.PrefetchScalarGridSpec(
            num_scalar_prefetch=0,
            grid=(B // Bt,),
            in_specs=[
                pl.BlockSpec((Bt, C, HW), lambda b: (b, 0, 0)),
                # Constant block index -> pipeline fetches params only once.
                pl.BlockSpec((M, C), lambda b: (0, 0)),
                pl.BlockSpec((C, M), lambda b: (0, 0)),
                pl.BlockSpec((1, M), lambda b: (0, 0)),
                pl.BlockSpec((1, M), lambda b: (0, 0)),
                pl.BlockSpec((1, C), lambda b: (0, 0)),
                pl.BlockSpec((1, C), lambda b: (0, 0)),
            ],
            out_specs=pl.BlockSpec((Bt, C, HW), lambda b: (b, 0, 0)),
        ),
        compiler_params=pltpu.CompilerParams(
            dimension_semantics=("parallel",),
            vmem_limit_bytes=32 * 1024 * 1024,
        ),
    )(x, w1, w2,
      b1.reshape(1, M), a1.reshape(1, M),
      b2.reshape(1, C), a2.reshape(1, C))
    return out.reshape(B, C, H, W)


def make_params(key, C, divide=4.0):
    """PyTorch-style SqueezeBlock params (Linear + PReLU, divide > 1 branch)."""
    M = int(C / divide)
    k1, k2, k3, k4, k5, k6 = jax.random.split(key, 6)
    lim1 = 1.0 / jnp.sqrt(C)
    lim2 = 1.0 / jnp.sqrt(M)
    w1 = jax.random.uniform(k1, (M, C), jnp.float32, -lim1, lim1)   # Linear(C->M)
    b1 = jax.random.uniform(k2, (M,), jnp.float32, -lim1, lim1)
    w2 = jax.random.uniform(k3, (C, M), jnp.float32, -lim2, lim2)   # Linear(M->C)
    b2 = jax.random.uniform(k4, (C,), jnp.float32, -lim2, lim2)
    a1 = (0.25 + 0.05 * jax.random.normal(k5, (M,))).astype(jnp.float32)
    a2 = (0.25 + 0.05 * jax.random.normal(k6, (C,))).astype(jnp.float32)
    return dict(w1=w1, b1=b1, a1=a1, w2=w2, b2=b2, a2=a2)


def reference(x, p):
    """Pure-JAX NCHW reference (independent code path)."""
    pooled = jnp.mean(x, axis=(2, 3))                                 # (B, C)
    h = jnp.einsum("bc,mc->bm", pooled, p["w1"],
                   precision=lax.Precision.HIGHEST) + p["b1"]
    h = jnp.where(h > 0, h, h * p["a1"])
    s = jnp.einsum("bm,cm->bc", h, p["w2"],
                   precision=lax.Precision.HIGHEST) + p["b2"]
    s = jnp.where(s > 0, s, s * p["a2"])
    return x * s[:, :, None, None]


if __name__ == "__main__":
    key = jax.random.PRNGKey(0)
    kx, kp, kx2 = jax.random.split(key, 3)

    # exp_size = 32, divide = 4 -> hidden = 8
    C, H, W = 32, 16, 16
    params = make_params(kp, C, divide=4.0)

    # Case 1: B=2 -> Bt=1, grid=(2,)  (keeps >= 2 grid steps for v7x dual-TC)
    x = jax.random.normal(kx, (2, C, H, W), dtype=jnp.float32)
    out = jax.block_until_ready(squeeze_block_forward(x, params))
    ref = reference(x, params)
    assert out.shape == x.shape
    assert jnp.allclose(out, ref, atol=1e-3, rtol=1e-3), \
        float(jnp.max(jnp.abs(out - ref)))

    # Case 2: B=8 -> Bt=4, grid=(2,)  (exercises the batched multi-image block)
    x2 = jax.random.normal(kx2, (8, C, H, W), dtype=jnp.float32)
    out2 = jax.block_until_ready(squeeze_block_forward(x2, params))
    ref2 = reference(x2, params)
    assert jnp.allclose(out2, ref2, atol=1e-3, rtol=1e-3), \
        float(jnp.max(jnp.abs(out2 - ref2)))

    print("KERNEL_OK")
</pallas_src>

<mosaic_0001>
module attributes {stable_mosaic.version = 11 : i64} {
  func.func @squeeze_block_kernel(%arg0: i32, %arg1: memref<1x32x256xf32, #tpu.memory_space<vmem>>, %arg2: memref<8x32xf32, #tpu.memory_space<vmem>>, %arg3: memref<32x8xf32, #tpu.memory_space<vmem>>, %arg4: memref<1x8xf32, #tpu.memory_space<vmem>>, %arg5: memref<1x8xf32, #tpu.memory_space<vmem>>, %arg6: memref<1x32xf32, #tpu.memory_space<vmem>>, %arg7: memref<1x32xf32, #tpu.memory_space<vmem>>, %arg8: memref<1x32x256xf32, #tpu.memory_space<vmem>>) attributes {dimension_semantics = [#tpu.dimension_semantics<parallel>], iteration_bounds = array<i64: 2>, scalar_prefetch = 0 : i64, scratch_operands = 0 : i64, tpu.core_type = #tpu.core_type<tc>, window_params = [{transform_indices = @transform_0, window_bounds = array<i64: 1, 32, 256>}, {pipeline_mode = #tpu.pipeline_mode<synchronous>, transform_indices = @transform_1, window_bounds = array<i64: 8, 32>}, {pipeline_mode = #tpu.pipeline_mode<synchronous>, transform_indices = @transform_2, window_bounds = array<i64: 32, 8>}, {pipeline_mode = #tpu.pipeline_mode<synchronous>, transform_indices = @transform_3, window_bounds = array<i64: 1, 8>}, {pipeline_mode = #tpu.pipeline_mode<synchronous>, transform_indices = @transform_4, window_bounds = array<i64: 1, 8>}, {pipeline_mode = #tpu.pipeline_mode<synchronous>, transform_indices = @transform_5, window_bounds = array<i64: 1, 32>}, {pipeline_mode = #tpu.pipeline_mode<synchronous>, transform_indices = @transform_6, window_bounds = array<i64: 1, 32>}, {transform_indices = @transform_7, window_bounds = array<i64: 1, 32, 256>}]} {
    %c0 = arith.constant 0 : index
    %c0_0 = arith.constant 0 : index
    %c0_1 = arith.constant 0 : index
    %0 = vector.load %arg1[%c0, %c0_0, %c0_1] : memref<1x32x256xf32, #tpu.memory_space<vmem>>, vector<1x32x256xf32>
    %cst = arith.constant dense<0.000000e+00> : vector<1x32xf32>
    %1 = vector.multi_reduction <add>, %0, %cst [2] : vector<1x32x256xf32> to vector<1x32xf32>
    %cst_2 = arith.constant 3.906250e-03 : f32
    %2 = vector.broadcast %cst_2 : f32 to vector<1x32xf32>
    %3 = arith.mulf %1, %2 : vector<1x32xf32>
    %4 = vector.shape_cast %3 : vector<1x32xf32> to vector<1x1x32xf32>
    %c0_3 = arith.constant 0 : index
    %c0_4 = arith.constant 0 : index
    %5 = vector.load %arg2[%c0_3, %c0_4] : memref<8x32xf32, #tpu.memory_space<vmem>>, vector<8x32xf32>
    %6 = vector.shape_cast %5 : vector<8x32xf32> to vector<1x8x32xf32>
    %7 = vector.broadcast %4 : vector<1x1x32xf32> to vector<1x8x32xf32>
    %8 = arith.mulf %7, %6 : vector<1x8x32xf32>
    %cst_5 = arith.constant dense<0.000000e+00> : vector<1x8xf32>
    %9 = vector.multi_reduction <add>, %8, %cst_5 [2] : vector<1x8x32xf32> to vector<1x8xf32>
    %c0_6 = arith.constant 0 : index
    %c0_7 = arith.constant 0 : index
    %10 = vector.load %arg4[%c0_6, %c0_7] : memref<1x8xf32, #tpu.memory_space<vmem>>, vector<1x8xf32>
    %11 = arith.addf %9, %10 : vector<1x8xf32>
    %cst_8 = arith.constant 0.000000e+00 : f32
    %12 = vector.broadcast %cst_8 : f32 to vector<1x8xf32>
    %13 = arith.cmpf ogt, %11, %12 : vector<1x8xf32>
    %c0_9 = arith.constant 0 : index
    %c0_10 = arith.constant 0 : index
    %14 = vector.load %arg5[%c0_9, %c0_10] : memref<1x8xf32, #tpu.memory_space<vmem>>, vector<1x8xf32>
    %15 = arith.mulf %11, %14 : vector<1x8xf32>
    %16 = arith.select %13, %11, %15 : vector<1x8xi1>, vector<1x8xf32>
    %17 = vector.shape_cast %16 : vector<1x8xf32> to vector<1x1x8xf32>
    %c0_11 = arith.constant 0 : index
    %c0_12 = arith.constant 0 : index
    %18 = vector.load %arg3[%c0_11, %c0_12] : memref<32x8xf32, #tpu.memory_space<vmem>>, vector<32x8xf32>
    %19 = vector.shape_cast %18 : vector<32x8xf32> to vector<1x32x8xf32>
    %20 = vector.broadcast %17 : vector<1x1x8xf32> to vector<1x32x8xf32>
    %21 = arith.mulf %20, %19 : vector<1x32x8xf32>
    %cst_13 = arith.constant dense<0.000000e+00> : vector<1x32xf32>
    %22 = vector.multi_reduction <add>, %21, %cst_13 [2] : vector<1x32x8xf32> to vector<1x32xf32>
    %c0_14 = arith.constant 0 : index
    %c0_15 = arith.constant 0 : index
    %23 = vector.load %arg6[%c0_14, %c0_15] : memref<1x32xf32, #tpu.memory_space<vmem>>, vector<1x32xf32>
    %24 = arith.addf %22, %23 : vector<1x32xf32>
    %cst_16 = arith.constant 0.000000e+00 : f32
    %25 = vector.broadcast %cst_16 : f32 to vector<1x32xf32>
    %26 = arith.cmpf ogt, %24, %25 : vector<1x32xf32>
    %c0_17 = arith.constant 0 : index
    %c0_18 = arith.constant 0 : index
    %27 = vector.load %arg7[%c0_17, %c0_18] : memref<1x32xf32, #tpu.memory_space<vmem>>, vector<1x32xf32>
    %28 = arith.mulf %24, %27 : vector<1x32xf32>
    %29 = arith.select %26, %24, %28 : vector<1x32xi1>, vector<1x32xf32>
    %30 = vector.shape_cast %29 : vector<1x32xf32> to vector<1x32x1xf32>
    %31 = vector.broadcast %30 : vector<1x32x1xf32> to vector<1x32x256xf32>
    %32 = arith.mulf %0, %31 : vector<1x32x256xf32>
    %c0_19 = arith.constant 0 : index
    %c0_20 = arith.constant 0 : index
    %c0_21 = arith.constant 0 : index
    %33 = vector.load %arg8[%c0_19, %c0_20, %c0_21] : memref<1x32x256xf32, #tpu.memory_space<vmem>>, vector<1x32x256xf32>
    tpu.vector_store %arg8[%c0_19, %c0_20, %c0_21], %32 {strides = array<i32>} : memref<1x32x256xf32, #tpu.memory_space<vmem>>, vector<1x32x256xf32>,
    return
  }
  func.func @transform_0(%arg0: i32) -> (i32, i32, i32) {
    %c0_i32 = arith.constant 0 : i32
    %c0_i32_0 = arith.constant 0 : i32
    %c0_i32_1 = arith.constant 0 : i32
    return %arg0, %c0_i32, %c0_i32_0 : i32, i32, i32
  }
  func.func @transform_1(%arg0: i32) -> (i32, i32) {
    %c0_i32 = arith.constant 0 : i32
    %c0_i32_0 = arith.constant 0 : i32
    %c0_i32_1 = arith.constant 0 : i32
    return %c0_i32, %c0_i32_0 : i32, i32
  }
  func.func @transform_2(%arg0: i32) -> (i32, i32) {
    %c0_i32 = arith.constant 0 : i32
    %c0_i32_0 = arith.constant 0 : i32
    %c0_i32_1 = arith.constant 0 : i32
    return %c0_i32, %c0_i32_0 : i32, i32
  }
  func.func @transform_3(%arg0: i32) -> (i32, i32) {
    %c0_i32 = arith.constant 0 : i32
    %c0_i32_0 = arith.constant 0 : i32
    %c0_i32_1 = arith.constant 0 : i32
    return %c0_i32, %c0_i32_0 : i32, i32
  }
  func.func @transform_4(%arg0: i32) -> (i32, i32) {
    %c0_i32 = arith.constant 0 : i32
    %c0_i32_0 = arith.constant 0 : i32
    %c0_i32_1 = arith.constant 0 : i32
    return %c0_i32, %c0_i32_0 : i32, i32
  }
  func.func @transform_5(%arg0: i32) -> (i32, i32) {
    %c0_i32 = arith.constant 0 : i32
    %c0_i32_0 = arith.constant 0 : i32
    %c0_i32_1 = arith.constant 0 : i32
    return %c0_i32, %c0_i32_0 : i32, i32
  }
  func.func @transform_6(%arg0: i32) -> (i32, i32) {
    %c0_i32 = arith.constant 0 : i32
    %c0_i32_0 = arith.constant 0 : i32
    %c0_i32_1 = arith.constant 0 : i32
    return %c0_i32, %c0_i32_0 : i32, i32
  }
  func.func @transform_7(%arg0: i32) -> (i32, i32, i32) {
    %c0_i32 = arith.constant 0 : i32
    %c0_i32_0 = arith.constant 0 : i32
    %c0_i32_1 = arith.constant 0 : i32
    return %arg0, %c0_i32, %c0_i32_0 : i32, i32, i32
  }
}

</mosaic_0001>

<bundles_post_ra>
// kernel: tpu_custom_call.1
= control target key start
LH: loop header
LB: loop body
LE: loop exit
PB: predicated region body
PF: predicated region fallthrough
CT: control target
= control target key end

     0   :  { %12 = vsyncpa [#allocation3], 0  ;;  %s2477_s0 = inlined_call_operand.hbm [shape: f32[2,32,256], index: 0, kind: input, shape index: {}]   ;;  %s2478_s1 = inlined_call_operand.vmem [shape: f32[8,32], index: 1, kind: input, shape index: {}]   ;;  %s2479_s2 = inlined_call_operand.vmem [shape: f32[32,8], index: 2, kind: input, shape index: {}]   ;;  %s2480_s3 = inlined_call_operand.vmem [shape: f32[1,8], index: 3, kind: input, shape index: {}]   ;;  %s2481_s4 = inlined_call_operand.vmem [shape: f32[1,8], index: 4, kind: input, shape index: {}]   ;;  %s2482_s5 = inlined_call_operand.vmem [shape: f32[1,32], index: 5, kind: input, shape index: {}]   ;;  %s2483_s6 = inlined_call_operand.vmem [shape: f32[1,32], index: 6, kind: input, shape index: {}]   ;;  %s2484_s7 = inlined_call_operand.hbm [shape: f32[2,32,256], index: 7, kind: output, shape index: {}]  }
   0x1   :  { %14 = vsyncpa [#allocation3 + $0x1], 0 }
   0x2   :  { %15 = vsyncpa [#allocation4], 0 }
   0x3   :  { %17 = vsyncpa [#allocation4 + $0x1], 0  ;;  %s1882_s24 = smov 0   ;;  %s1884_s25 = smov 0  }
   0x4   :  { %s1886_s26 = smov 0   ;;  %s1888_s27 = smov 0  }
   0x5 LB: > { %s1903_s28 = sadd.s32 4294967295, %s1833_s27   ;;  %s1656_s29 = sadd.s32 4294967294, %s1833_s27   ;;  %s1833_s27 = sphi %s1888_s27, %s2497_s27   ;;  %s1829_s26 = sphi %s1886_s26, %s2496_s26   ;;  %s1825_s25 = sphi %s1884_s25, %s2495_s25   ;;  %s1821_s24 = sphi %s1882_s24, %s2494_s24  }
   0x6   : > { %s1907_s30 = sadd.s32 1, %s1833_s27   ;;  %s30_s8 = sadd.s32 1, %s1829_s26 }
   0x7   : > { %s27_s9 = ssub.s32 %s1833_s27, %s1907_s30  ;;  %p37_p0 = scmp.ne.s32.totalorder %s1829_s26, %s1825_s25 }
   0x8   : > { %p28_p1 = scmp.eq.s32.totalorder %s27_s9, 0  ;;  %p38_p2 = scmp.eq.s32.totalorder %s1833_s27, 0 }
   0x9   : > { %p43_p3 = scmp.ne.s32.totalorder %s1825_s25, %s1821_s24  ;;  %p44_p4 = scmp.eq.s32.totalorder %s1903_s28, 0 }
   0xa   : > { %s1919_s10 = scalar_select %p28_p1, %s1829_s26, %s30_s8  }
   0xb   : > { %p1921_p5 = por %p38_p2, %p37_p0  ;;  %p1925_p6 = por %p44_p4, %p43_p3 }
   0xc   : > { %p193_p7 = scmp.eq.s32.totalorder %s1903_s28, 1  ;;  %p199_p8 = scmp.eq.s32.totalorder %s1656_s29, 1 }
   0xd   : > { %p1688_p10 = scmp.lt.s32.totalorder %s1833_s27, 2  ;;  %s237_s15 = sand.u32 1, %s1829_s26  }
   0xe   : > { %p1932_p11 = por %p193_p7, %p37_p0  ;;  %p1936_p12 = por %p199_p8, %p43_p3 }
   0xf   : > { %s1674_s16 = sshll.u32 %s1833_s27, 10  ;;  %s1659_s17 = sshll.u32 %s237_s15, 6 }
  0x10   : > { %s2488_s13 = scalar_select %p1932_p11, 1, 0 }
  0x11   : > { %s2489_s14 = scalar_select %p1936_p12, 1, 0 }
  0x12   : > { %s1945_s20 = scalar_lea.hbm %s2477_s0, %s1674_s16  ;;  %s241_s21 = scalar_lea.vmem [#allocation2], %s1659_s17 }
  0x13   : > { %s248_s22 = sshll.u32 %s241_s21, 4  ;;  %p1949_p13 = pnand %p1688_p10, %p1921_p5  ;;  %s1953_s22 = int_to_ptr.vmem [resolvable:$true] %s248_s22 }
  0x14   : > { %s1955_s29 = scalar_lea.sflag [#allocation3], %s237_s15  ;;  %s1737_s8 = scalar_lea.hbm %s1945_s20, 1024 }
  0x15   : > { %p1738_p0 = scmp.ne.s32.totalorder %s1945_s20, %s1737_s8  ;;  %p1739_p1 = pneg %p1949_p13 }
  0x16   : > { %s1742_s16 = scalar_lea.hbm %s2477_s0, 2048  ;;  %p1743_p4 = scmp.lt.u32.totalorder %s1945_s20, %s2477_s0 }
  0x17   : > { %p1740_p2 = pnand %p1739_p1, %p1738_p0  ;;  %p1744_p5 = scmp.lt.u32.totalorder %s1742_s16, %s1737_s8 }
  0x18   : > { %p1746_p8 = scmp.lt.u32.totalorder %s1737_s8, %s1945_s20 }
  0x19   : > { %p1741_p3 = pneg %p1740_p2  ;;  %p1745_p7 = por %p1744_p5, %p1743_p4 }
  0x1b   : > { %p1747_p10 = por %p1746_p8, %p1745_p7 }
  0x1d   : > { %p1748_p9 = pnand %p1747_p10, %p1741_p3 }
  0x1f   : > { %1751 = shalt.err (!%p1748_p9)
}
  0x20   : > { %s1752_s15 = scalar_lea.vmem %s1953_s22, 1024  ;;  %s1835_s19 = smov [#allocation2]  }
  0x21   : > { %p1753_p0 = scmp.ne.s32.totalorder %s1953_s22, %s1752_s15  ;;  %s1757_s21 = sshll.u32 %s1835_s19, 4  ;;  %s1758_s21 = int_to_ptr.vmem [resolvable:$false] %s1757_s21 }
  0x22   : > { %s1759_s9 = scalar_lea.vmem %s1758_s21, 2048  ;;  %p1760_p11 = scmp.lt.s32.totalorder %s1953_s22, %s1758_s21 }
  0x23   : > { %p1755_p2 = pnand %p1753_p0, %p1739_p1  ;;  %p1761_p4 = scmp.lt.s32.totalorder %s1759_s9, %s1752_s15 }
  0x25   : > { %p1756_p12 = pneg %p1755_p2  ;;  %p1762_p5 = por %p1761_p4, %p1760_p11 }
  0x27   : > { %p1763_p7 = pnand %p1762_p5, %p1756_p12 }
  0x29   : > { %1766 = shalt.err (!%p1763_p7)
}
  0x2a   : > { %s1836_s8 = smov 256   ;;  %s1837_s11 = smov 16  }
  0x2b   : > { %1683 = dma.hbm_to_vmem [thread:$0]  (!%p1949_p13), %s1945_s20, 1024, %s1953_s22, %s1955_s29, %s1836_s8, %s1836_s8, %s1837_s11  }
  0x2c   : > { %p1662_p9 = scmp.ge.s32.totalorder %s1833_s27, 1  ;;  %p256_p1 = scmp.lt.s32.totalorder %s1833_s27, 3 }
  0x2e   : > { %p257_p3 = pnand %p1662_p9, %p256_p1 }
  0x2f   : > { %s1986_s16 = sand.u32 (!%p257_p3), 1, %s1825_s25  }
  0x30   : > { %260 = sbr.rel (%p257_p3) target bundleno = 1048 (0x418), region = 48  ;;  %s1663_s17 = sshll.u32 (!%p257_p3), %s1986_s16, 6 }
  0x31   : > { %s263_s18 = scalar_lea.sflag (!%p257_p3), [#allocation3], %s1986_s16  ;;  %s1992_s15 = scalar_lea.vmem (!%p257_p3), [#allocation2], %s1663_s17 }
  0x37   : > { %1812 = dma.done.wait (%p1925_p6), %s263_s18, 1024  }
  0x38   : > { %1814 = vsyncadd (%p1925_p6), %s263_s18, 4294966272  ;;  %v301_v0 = vld [vmem:[%s1992_s15 + $0x20] sm:$0xff]  ;;  %v302_v1 = vld [vmem:[%s1992_s15 + $0x28] sm:$0xff]  ;;  %v323_v12 = vlaneseq  ;;  %v1838_v18 = vmov 0   ;;  %vm678_vm0 = vcmask 130112   ;;  %vm685_vm1 = vcmask 195712  }
  0x39   : > { %v297_v2 = vld [vmem:[%s1992_s15] sm:$0xff]  ;;  %v311_v3 = vadd.f32 %v302_v1, %v301_v0  ;;  %v298_v4 = vld [vmem:[%s1992_s15 + $0x8] sm:$0xff]  ;;  %v303_v5 = vld [vmem:[%s1992_s15 + $0x30] sm:$0xff]  ;;  %1728 = vset.pattern.permute.xlu1 %v1838_v18  ;;  %1727 = vset.pattern.permute.xlu0 %v1838_v18  ;;  %vm692_vm2 = vcmask 261312   ;;  %vm827_vm3 = vcmask 1041409   ;;  %vm829_vm4 = vcmask 1042434  }
  0x3a   : > { %v304_v6 = vld [vmem:[%s1992_s15 + $0x38] sm:$0xff]  ;;  %v305_v7 = vadd.f32 %v298_v4, %v297_v2  ;;  %v299_v8 = vld [vmem:[%s1992_s15 + $0x10] sm:$0xff]  ;;  %v2007_v13 = vshrl.u32 %v323_v12, 7  ;;  %v321_v15 = vld [vmem:[%s2478_s1] sm:$0xff]  ;;  %vm831_vm5 = vcmask 1043459   ;;  %vm833_vm6 = vcmask 1044484  }
  0x3b   : > { %v300_v9 = vld [vmem:[%s1992_s15 + $0x18] sm:$0xff]  ;;  %312 = vadd.xlane.f32.xlu1 %v311_v3  ;;  %v314_v10 = vadd.f32 %v304_v6, %v303_v5  ;;  %vm835_vm7 = vcmask 1045509   ;;  %vm837_vm8 = vcmask 1046534   ;;  %vm839_vm9 = vcmask 1047559   ;;  %s296_s9 = scalar_lea.vmem [#allocation5], %s1663_s17  ;;  %s1675_s11 = sshll.u32 %s1903_s28, 10 }
  0x3c   : > { %306 = vadd.xlane.f32.xlu0 %v305_v7  ;;  %v308_v11 = vadd.f32 %v300_v9, %v299_v8  ;;  %v2010_v14 = vsub.s32 0, %v2007_v13  ;;  %v2017_v17 = vsub.s32 1, %v2007_v13  ;;  %v2021_v20 = vsub.s32 2, %v2007_v13  ;;  %s1583_s8 = sshll.u32 %s296_s9, 4  ;;  %s2431_s12 = scalar_lea.hbm %s2484_s7, %s1675_s11  ;;  %s2424_s8 = int_to_ptr.vmem [resolvable:$true] %s1583_s8 }
  0x3d   : > { %v2025_v22 = vsub.s32 3, %v2007_v13  ;;  %v2029_v24 = vsub.s32 4, %v2007_v13  ;;  %v2033_v26 = vsub.s32 5, %v2007_v13  ;;  %v2037_v28 = vsub.s32 6, %v2007_v13  ;;  %s1570_s28 = scalar_lea.sflag [#allocation4], %s1986_s16  ;;  %s1767_s20 = scalar_lea.vmem %s2424_s8, 1024 }
  0x3e   : > { %v326_v16 = vrot.slane %v321_v15, %v2010_v14  ;;  %v345_v19 = vrot.slane %v321_v15, %v2017_v17  ;;  %v364_v21 = vrot.slane %v321_v15, %v2021_v20  ;;  %v2041_v30 = vsub.s32 7, %v2007_v13  ;;  %p1768_p6 = scmp.ne.s32.totalorder %s2424_s8, %s1767_s20  ;;  %p2491_p11 = scmp.ne.s32.totalorder %s2488_s13, 0 }
  0x3f   : > { %315 = vadd.xlane.f32.xlu1 %v314_v10  ;;  %v383_v23 = vrot.slane %v321_v15, %v2025_v22  ;;  %v402_v25 = vrot.slane %v321_v15, %v2029_v24  ;;  %v421_v27 = vrot.slane %v321_v15, %v2033_v26  ;;  %v440_v29 = vrot.slane %v321_v15, %v2037_v28  ;;  %s1839_s22 = smov [#allocation5]  }
  0x40   : > { %309 = vadd.xlane.f32.xlu0 %v308_v11  ;;  %v459_v31 = vrot.slane %v321_v15, %v2041_v30  ;;  %vm842_vm10 = vcmask 261120   ;;  %vm1454_vm12 = vcmask 64512   ;;  %p1769_p12 = pnand %p1768_p6, %p2491_p11  ;;  %s1771_s23 = sshll.u32 %s1839_s22, 4  ;;  %s1772_s23 = int_to_ptr.vmem [resolvable:$false] %s1771_s23 }
  0x41   : > { %s1773_s29 = scalar_lea.vmem %s1772_s23, 2048  ;;  %p1774_p8 = scmp.lt.s32.totalorder %s2424_s8, %s1772_s23 }
  0x42   : > { %p1770_p13 = pneg %p1769_p12  ;;  %p1775_p10 = scmp.lt.s32.totalorder %s1773_s29, %s1767_s20 }
  0x44   : > { %p1776_p0 = por %p1775_p10, %p1774_p8 }
  0x46   : > { %p1777_p2 = pnand %p1776_p0, %p1770_p13 }
  0x50   : > { %332 = vbcast.lane.b32.xlu1 %v326_v16, 264 }
  0x54   : > { %336 = vbcast.lane.b32.xlu1 %v326_v16, 272 }
  0x56   : > { %328 = vbcast.lane.b32.xlu0 %v326_v16, 256 }
  0x58   : > { %340 = vbcast.lane.b32.xlu1 %v326_v16, 280 }
  0x5a   : > { %347 = vbcast.lane.b32.xlu0 %v345_v19, 256 }
  0x5c   : > { %351 = vbcast.lane.b32.xlu1 %v345_v19, 264 }
  0x5e   : > { %355 = vbcast.lane.b32.xlu0 %v345_v19, 272 }
  0x60   : > { %359 = vbcast.lane.b32.xlu1 %v345_v19, 280 }
  0x62   : > { %366 = vbcast.lane.b32.xlu0 %v364_v21, 256 }
  0x64   : > { %370 = vbcast.lane.b32.xlu1 %v364_v21, 264 }
  0x66   : > { %374 = vbcast.lane.b32.xlu0 %v364_v21, 272 }
  0x68   : > { %378 = vbcast.lane.b32.xlu1 %v364_v21, 280 }
  0x6a   : > { %385 = vbcast.lane.b32.xlu0 %v383_v23, 256 }
  0x6c   : > { %389 = vbcast.lane.b32.xlu1 %v383_v23, 264 }
  0x6e   : > { %393 = vbcast.lane.b32.xlu0 %v383_v23, 272 }
  0x70   : > { %397 = vbcast.lane.b32.xlu1 %v383_v23, 280 }
  0x72   : > { %404 = vbcast.lane.b32.xlu0 %v402_v25, 256 }
  0x74   : > { %408 = vbcast.lane.b32.xlu1 %v402_v25, 264 }
  0x76   : > { %412 = vbcast.lane.b32.xlu0 %v402_v25, 272 }
  0x78   : > { %416 = vbcast.lane.b32.xlu1 %v402_v25, 280 }
  0x7a   : > { %423 = vbcast.lane.b32.xlu0 %v421_v27, 256 }
  0x7c   : > { %427 = vbcast.lane.b32.xlu1 %v421_v27, 264 }
  0x7e   : > { %431 = vbcast.lane.b32.xlu0 %v421_v27, 272 }
  0x80   : > { %442 = vbcast.lane.b32.xlu1 %v440_v29, 256 }
  0x82   : > { %446 = vbcast.lane.b32.xlu0 %v440_v29, 264 }
  0x84   : > { %435 = vbcast.lane.b32.xlu1 %v421_v27, 280 }
  0x86   : > { %450 = vbcast.lane.b32.xlu0 %v440_v29, 272 }
  0x88   : > { %461 = vbcast.lane.b32.xlu1 %v459_v31, 256 }
  0x8a   : > { %465 = vbcast.lane.b32.xlu0 %v459_v31, 264 }
  0x8c   : > { %454 = vbcast.lane.b32.xlu1 %v440_v29, 280 }
  0x8e   : > { %469 = vbcast.lane.b32.xlu0 %v459_v31, 272 }
  0x90   : > { %473 = vbcast.lane.b32.xlu1 %v459_v31, 280 }
  0xc8   : > { %v313_v32 = vpop.xlane.xlu1 %312 }
  0xc9   : > { %v307_v33 = vpop.xlane.xlu0 %306  ;;  %v2050_v42 = vmul.f32 0.00390625, %v313_v32 }
  0xca   : > { %v2044_v36 = vmul.f32 0.00390625, %v307_v33 }
  0xcc   : > { %v316_v34 = vpop.xlane.xlu1 %315 }
  0xcd   : > { %v310_v35 = vpop.xlane.xlu0 %309  ;;  %v2053_v46 = vmul.f32 0.00390625, %v316_v34 }
  0xce   : > { %v2046_v37 = vmul.f32 0.00390625, %v310_v35 }
  0xd0   : > { %v333_v38 = vpop.permute.xlu1 %332 }
  0xd1   : > { %v508_v39 = vmul.f32 %v333_v38, %v2046_v37  ;;  %v329_v40 = vpop.permute.xlu0 %328 }
  0xd2   : > { %v507_v41 = vmul.f32 %v329_v40, %v2044_v36 }
  0xd3   : > { %575 = vperm.xlu1 %1728, %v508_v39  }
  0xd4   : > { %572 = vperm.xlu0 %1727, %v507_v41   ;;  %v337_v43 = vpop.permute.xlu1 %336 }
  0xd5   : > { %v509_v44 = vmul.f32 %v337_v43, %v2050_v42  ;;  %v348_v45 = vpop.permute.xlu0 %347 }
  0xd6   : > { %v511_v48 = vmul.f32 %v348_v45, %v2044_v36 }
  0xd7   : > { %578 = vperm.xlu1 %1728, %v509_v44  }
  0xd8   : > { %v341_v47 = vpop.permute.xlu1 %340 }
  0xd9   : > { %v510_v49 = vmul.f32 %v341_v47, %v2053_v46  ;;  %v356_v50 = vpop.permute.xlu0 %355 }
  0xda   : > { %v513_v52 = vmul.f32 %v356_v50, %v2050_v42 }
  0xdb   : > { %581 = vperm.xlu0 %1727, %v510_v49   ;;  %584 = vperm.xlu1 %1728, %v511_v48  }
  0xdc   : > { %v352_v51 = vpop.permute.xlu1 %351 }
  0xdd   : > { %v512_v53 = vmul.f32 %v352_v51, %v2046_v37  ;;  %v367_v54 = vpop.permute.xlu0 %366 }
  0xde   : > { %v515_v56 = vmul.f32 %v367_v54, %v2044_v36 }
  0xdf   : > { %587 = vperm.xlu0 %1727, %v512_v53   ;;  %590 = vperm.xlu1 %1728, %v513_v52   ;;  %v873_v52 = vld [vmem:[%s2479_s2 + $0x18] sm:$0xff] }
  0xe0   : > { %v360_v55 = vpop.permute.xlu1 %359 }
  0xe1   : > { %v514_v57 = vmul.f32 %v360_v55, %v2053_v46  ;;  %v375_v58 = vpop.permute.xlu0 %374  ;;  %v1665_v55 = vld [vmem:[%s2480_s3] ss:$0 sm:$0xff] }
  0xe2   : > { %v517_v60 = vmul.f32 %v375_v58, %v2050_v42 }
  0xe3   : > { %593 = vperm.xlu0 %1727, %v514_v57   ;;  %596 = vperm.xlu1 %1728, %v515_v56   ;;  %v1070_v57 = vrot.slane %v873_v52, %v2025_v22 }
  0xe4   : > { %v371_v59 = vpop.permute.xlu1 %370 }
  0xe5   : > { %v516_v61 = vmul.f32 %v371_v59, %v2046_v37  ;;  %v386_v62 = vpop.permute.xlu0 %385 }
  0xe6   : > { %v519_v0 = vmul.f32 %v386_v62, %v2044_v36 }
  0xe7   : > { %599 = vperm.xlu0 %1727, %v516_v61   ;;  %602 = vperm.xlu1 %1728, %v517_v60   ;;  %v1077_v61 = vrot.slane %v873_v52, %v2029_v24 }
  0xe8   : > { %v379_v63 = vpop.permute.xlu1 %378 }
  0xe9   : > { %v394_v1 = vpop.permute.xlu0 %393  ;;  %v518_v3 = vmul.f32 %v379_v63, %v2053_v46 }
  0xea   : > { %v521_v7 = vmul.f32 %v394_v1, %v2050_v42  ;;  %v872_v1 = vld [vmem:[%s2479_s2 + $0x10] sm:$0xff] }
  0xeb   : > { %608 = vperm.xlu0 %1727, %v519_v0  }
  0xec   : > { %v390_v2 = vpop.permute.xlu1 %389 }
  0xed   : > { %v520_v4 = vmul.f32 %v390_v2, %v2046_v37  ;;  %v405_v5 = vpop.permute.xlu0 %404  ;;  %v1084_v2 = vrot.slane %v873_v52, %v2033_v26 }
  0xee   : > { %v523_v8 = vmul.f32 %v405_v5, %v2044_v36  ;;  %v1000_v5 = vrot.slane %v872_v1, %v2017_v17 }
  0xef   : > { %611 = vperm.xlu1 %1728, %v520_v4   ;;  %605 = vperm.xlu0 %1727, %v518_v3   ;;  %v993_v3 = vrot.slane %v872_v1, %v2010_v14 }
  0xf0   : > { %v398_v6 = vpop.permute.xlu1 %397 }
  0xf1   : > { %v413_v9 = vpop.permute.xlu0 %412  ;;  %v522_v11 = vmul.f32 %v398_v6, %v2053_v46  ;;  %v1091_v6 = vrot.slane %v873_v52, %v2037_v28 }
  0xf2   : > { %v525_v19 = vmul.f32 %v413_v9, %v2050_v42 }
  0xf3   : > { %614 = vperm.xlu1 %1728, %v521_v7   ;;  %620 = vperm.xlu0 %1727, %v523_v8   ;;  %v1049_v7 = vrot.slane %v873_v52, %v2010_v14 }
  0xf4   : > { %v409_v10 = vpop.permute.xlu1 %408 }
  0xf5   : > { %v524_v15 = vmul.f32 %v409_v10, %v2046_v37  ;;  %v424_v16 = vpop.permute.xlu0 %423  ;;  %v1098_v10 = vrot.slane %v873_v52, %v2041_v30 }
  0xf6   : > { %v527_v21 = vmul.f32 %v424_v16, %v2044_v36  ;;  %v1014_v16 = vrot.slane %v872_v1, %v2025_v22 }
  0xf7   : > { %623 = vperm.xlu1 %1728, %v524_v15   ;;  %617 = vperm.xlu0 %1727, %v522_v11  }
  0xf8   : > { %v417_v18 = vpop.permute.xlu1 %416 }
  0xf9   : > { %v432_v23 = vpop.permute.xlu0 %431  ;;  %v526_v27 = vmul.f32 %v417_v18, %v2053_v46 }
  0xfa   : > { %v529_v33 = vmul.f32 %v432_v23, %v2050_v42 }
  0xfb   : > { %626 = vperm.xlu1 %1728, %v525_v19   ;;  %632 = vperm.xlu0 %1727, %v527_v21   ;;  %v1021_v21 = vrot.slane %v872_v1, %v2029_v24 }
  0xfc   : > { %v428_v25 = vpop.permute.xlu1 %427 }
  0xfd   : > { %v528_v29 = vmul.f32 %v428_v25, %v2046_v37  ;;  %v447_v31 = vpop.permute.xlu0 %446 }
  0xfe   : > { %v532_v39 = vmul.f32 %v447_v31, %v2046_v37 }
  0xff   : > { %635 = vperm.xlu1 %1728, %v528_v29   ;;  %629 = vperm.xlu0 %1727, %v526_v27  }
 0x100   : > { %v443_v32 = vpop.permute.xlu1 %442 }
 0x101   : > { %v531_v34 = vmul.f32 %v443_v32, %v2044_v36  ;;  %v451_v35 = vpop.permute.xlu0 %450 }
 0x102   : > { %v533_v44 = vmul.f32 %v451_v35, %v2050_v42 }
 0x103   : > { %644 = vperm.xlu0 %1727, %v531_v34   ;;  %638 = vperm.xlu1 %1728, %v529_v33   ;;  %v1035_v34 = vrot.slane %v872_v1, %v2037_v28 }
 0x104   : > { %v436_v38 = vpop.permute.xlu1 %435 }
 0x105   : > { %v530_v40 = vmul.f32 %v436_v38, %v2053_v46  ;;  %v466_v41 = vpop.permute.xlu0 %465 }
 0x106   : > { %v536_v48 = vmul.f32 %v466_v41, %v2046_v37  ;;  %v871_v37 = vld [vmem:[%s2479_s2 + $0x8] sm:$0xff]  ;;  %v1042_v41 = vrot.slane %v872_v1, %v2041_v30 }
 0x107   : > { %641 = vperm.xlu0 %1727, %v530_v40   ;;  %647 = vperm.xlu1 %1728, %v532_v39   ;;  %v958_v56 = vrot.slane %v871_v37, %v2025_v22  ;;  %v965_v59 = vrot.slane %v871_v37, %v2029_v24  ;;  %v937_v62 = vrot.slane %v871_v37, %v2010_v14 }
 0x108   : > { %v462_v43 = vpop.permute.xlu1 %461  ;;  %v972_v63 = vrot.slane %v871_v37, %v2033_v26  ;;  %v944_v0 = vrot.slane %v871_v37, %v2017_v17  ;;  %v979_v4 = vrot.slane %v871_v37, %v2037_v28  ;;  %v986_v8 = vrot.slane %v871_v37, %v2041_v30 }
 0x109   : > { %v535_v45 = vmul.f32 %v462_v43, %v2044_v36  ;;  %v470_v50 = vpop.permute.xlu0 %469  ;;  %v1056_v36 = vrot.slane %v873_v52, %v2017_v17  ;;  %v951_v11 = vrot.slane %v871_v37, %v2021_v20 }
 0x10a   : > { %v537_v53 = vmul.f32 %v470_v50, %v2050_v42  ;;  %v1666_v42 = vld [vmem:[%s2481_s4] ss:$0 sm:$0xff] }
 0x10b   : > { %656 = vperm.xlu0 %1727, %v535_v45   ;;  %650 = vperm.xlu1 %1728, %v533_v44  }
 0x10c   : > { %v455_v47 = vpop.permute.xlu1 %454 }
 0x10d   : > { %v534_v49 = vmul.f32 %v455_v47, %v2053_v46 }
 0x10f   : > { %653 = vperm.xlu0 %1727, %v534_v49   ;;  %659 = vperm.xlu1 %1728, %v536_v48   ;;  %v668_v49 = vand.u32 127, %v323_v12 }
 0x110   : > { %v474_v51 = vpop.permute.xlu1 %473 }
 0x111   : > { %v538_v54 = vmul.f32 %v474_v51, %v2053_v46  ;;  %v2101_v46 = vld [vmem:[%s2479_s2] sm:$0xff]  ;;  %v2178_v37 = vsub.s32 %v668_v49, %v2007_v13 }
 0x112   : > { %v881_v58 = vrot.slane %v2101_v46, %v2010_v14  ;;  %v888_v60 = vrot.slane %v2101_v46, %v2017_v17  ;;  %v895_v9 = vrot.slane %v2101_v46, %v2021_v20  ;;  %v1007_v17 = vrot.slane %v872_v1, %v2021_v20 }
 0x113   : > { %665 = vperm.xlu0 %1727, %v538_v54   ;;  %662 = vperm.xlu1 %1728, %v537_v53   ;;  %v1063_v14 = vrot.slane %v873_v52, %v2021_v20  ;;  %v902_v15 = vrot.slane %v2101_v46, %v2025_v22  ;;  %v909_v18 = vrot.slane %v2101_v46, %v2029_v24  ;;  %v673_v52 = vadd.s32 4294967288, %v668_v49 }
 0x114   : > { %v916_v20 = vrot.slane %v2101_v46, %v2033_v26  ;;  %v1028_v22 = vrot.slane %v872_v1, %v2033_v26  ;;  %v923_v24 = vrot.slane %v2101_v46, %v2037_v28  ;;  %v930_v39 = vrot.slane %v2101_v46, %v2041_v30 }
 0x115   : > { %v680_v30 = vadd.s32 4294967280, %v668_v49  ;;  %v687_v53 = vadd.s32 4294967272, %v668_v49 }
 0x117   : > { %1058 = vbcast.lane.b32.xlu1 %v1056_v36, 256  ;;  %853 = vbcast.lane.b32.xlu0 %v1665_v55, 256  ;;  %v2181_v55 = vsub.s32 %v673_v52, %v2007_v13  ;;  %v2187_v12 = vsub.s32 %v687_v53, %v2007_v13 }
 0x11b   : > { %960 = vbcast.lane.b32.xlu1 %v958_v56, 256  ;;  %865 = vbcast.lane.b32.xlu0 %v1666_v42, 256  ;;  %v2184_v56 = vsub.s32 %v680_v30, %v2007_v13 }
 0x11f   : > { %1072 = vbcast.lane.b32.xlu1 %v1070_v57, 256  ;;  %883 = vbcast.lane.b32.xlu0 %v881_v58, 256 }
 0x123   : > { %967 = vbcast.lane.b32.xlu1 %v965_v59, 256  ;;  %890 = vbcast.lane.b32.xlu0 %v888_v60, 256 }
 0x127   : > { %1079 = vbcast.lane.b32.xlu1 %v1077_v61, 256  ;;  %939 = vbcast.lane.b32.xlu0 %v937_v62, 256 }
 0x12b   : > { %974 = vbcast.lane.b32.xlu1 %v972_v63, 256  ;;  %946 = vbcast.lane.b32.xlu0 %v944_v0, 256 }
 0x12f   : > { %1086 = vbcast.lane.b32.xlu1 %v1084_v2, 256  ;;  %995 = vbcast.lane.b32.xlu0 %v993_v3, 256 }
 0x133   : > { %981 = vbcast.lane.b32.xlu1 %v979_v4, 256  ;;  %1002 = vbcast.lane.b32.xlu0 %v1000_v5, 256 }
 0x137   : > { %1093 = vbcast.lane.b32.xlu1 %v1091_v6, 256  ;;  %1051 = vbcast.lane.b32.xlu0 %v1049_v7, 256 }
 0x13b   : > { %988 = vbcast.lane.b32.xlu1 %v986_v8, 256  ;;  %897 = vbcast.lane.b32.xlu0 %v895_v9, 256 }
 0x13f   : > { %1100 = vbcast.lane.b32.xlu1 %v1098_v10, 256  ;;  %953 = vbcast.lane.b32.xlu0 %v951_v11, 256 }
 0x143   : > { %1009 = vbcast.lane.b32.xlu0 %v1007_v17, 256 }
 0x147   : > { %1065 = vbcast.lane.b32.xlu0 %v1063_v14, 256 }
 0x14b   : > { %904 = vbcast.lane.b32.xlu0 %v902_v15, 256 }
 0x14f   : > { %1016 = vbcast.lane.b32.xlu0 %v1014_v16, 256 }
 0x152   : > { %v2134_v19 = vpop.permute.xlu1 %575 }
 0x153   : > { %911 = vbcast.lane.b32.xlu0 %v909_v18, 256  ;;  %v2137_v23 = vpop.permute.xlu0 %572  ;;  %v677_v58 = vrot.slane %v2134_v19, %v2181_v55 }
 0x154   : > { %v672_v59 = vrot.slane %v2137_v23, %v2178_v37 }
 0x156   : > { %v2139_v25 = vpop.permute.xlu1 %578  ;;  %v679_v6 = vsel %vm678_vm0, %v677_v58, %v672_v59 }
 0x157   : > { %1023 = vbcast.lane.b32.xlu0 %v1021_v21, 256  ;;  %v684_v61 = vrot.slane %v2139_v25, %v2184_v56 }
 0x159   : > { %v686_v9 = vsel %vm685_vm1, %v684_v61, %v679_v6 }
 0x15a   : > { %v585_v27 = vpop.permute.xlu1 %584  ;;  %v2143_v29 = vpop.permute.xlu0 %581 }
 0x15b   : > { %918 = vbcast.lane.b32.xlu0 %v916_v20, 256  ;;  %v697_v13 = vrot.slane %v585_v27, %v2178_v37  ;;  %v691_v62 = vrot.slane %v2143_v29, %v2187_v12 }
 0x15d   : > { %v693_v10 = vsel %vm692_vm2, %v691_v62, %v686_v9 }
 0x15e   : > { %v2146_v31 = vpop.permute.xlu1 %590  ;;  %v588_v32 = vpop.permute.xlu0 %587 }
 0x15f   : > { %1030 = vbcast.lane.b32.xlu0 %v1028_v22, 256  ;;  %v701_v57 = vrot.slane %v588_v32, %v2181_v55  ;;  %v706_v63 = vrot.slane %v2146_v31, %v2184_v56 }
 0x161   : > { %v702_v3 = vsel %vm678_vm0, %v701_v57, %v697_v13 }
 0x162   : > { %v2150_v33 = vpop.permute.xlu0 %593  ;;  %v597_v35 = vpop.permute.xlu1 %596  ;;  %v707_v11 = vsel %vm685_vm1, %v706_v63, %v702_v3 }
 0x163   : > { %925 = vbcast.lane.b32.xlu0 %v923_v24, 256  ;;  %v716_v0 = vrot.slane %v597_v35, %v2178_v37  ;;  %v711_v4 = vrot.slane %v2150_v33, %v2187_v12 }
 0x165   : > { %v712_v18 = vsel %vm692_vm2, %v711_v4, %v707_v11 }
 0x166   : > { %v600_v38 = vpop.permute.xlu0 %599  ;;  %v603_v40 = vpop.permute.xlu1 %602  ;;  %v828_v49 = vsel %vm827_vm3, %v712_v18, %v693_v10 }
 0x167   : > { %1037 = vbcast.lane.b32.xlu0 %v1035_v34, 256  ;;  %v720_v60 = vrot.slane %v600_v38, %v2181_v55  ;;  %v725_v5 = vrot.slane %v603_v40, %v2184_v56 }
 0x169   : > { %v721_v7 = vsel %vm678_vm0, %v720_v60, %v716_v0 }
 0x16a   : > { %v2155_v26 = vpop.permute.xlu0 %608  ;;  %v726_v19 = vsel %vm685_vm1, %v725_v5, %v721_v7 }
 0x16b   : > { %932 = vbcast.lane.b32.xlu0 %v930_v39, 256  ;;  %v735_v17 = vrot.slane %v2155_v26, %v2178_v37 }
 0x16e   : > { %v612_v43 = vpop.permute.xlu1 %611  ;;  %v2158_v44 = vpop.permute.xlu0 %605 }
 0x16f   : > { %1044 = vbcast.lane.b32.xlu0 %v1042_v41, 256  ;;  %v739_v8 = vrot.slane %v612_v43, %v2181_v55  ;;  %v730_v14 = vrot.slane %v2158_v44, %v2187_v12 }
 0x171   : > { %v740_v25 = vsel %vm678_vm0, %v739_v8, %v735_v17  ;;  %v731_v33 = vsel %vm692_vm2, %v730_v14, %v726_v19 }
 0x172   : > { %v2160_v45 = vpop.permute.xlu1 %614  ;;  %v2162_v47 = vpop.permute.xlu0 %620  ;;  %v830_v30 = vsel %vm829_vm4, %v731_v33, %v828_v49 }
 0x173   : > { %v744_v21 = vrot.slane %v2160_v45, %v2184_v56  ;;  %v754_v22 = vrot.slane %v2162_v47, %v2178_v37 }
 0x175   : > { %v745_v26 = vsel %vm685_vm1, %v744_v21, %v740_v25 }
 0x176   : > { %v2164_v28 = vpop.permute.xlu1 %623  ;;  %v2166_v48 = vpop.permute.xlu0 %617 }
 0x177   : > { %v758_v23 = vrot.slane %v2164_v28, %v2181_v55  ;;  %v749_v20 = vrot.slane %v2166_v48, %v2187_v12 }
 0x179   : > { %v759_v41 = vsel %vm678_vm0, %v758_v23, %v754_v22  ;;  %v750_v45 = vsel %vm692_vm2, %v749_v20, %v745_v26 }
 0x17a   : > { %v2169_v50 = vpop.permute.xlu1 %626  ;;  %v2171_v51 = vpop.permute.xlu0 %632 }
 0x17b   : > { %v763_v27 = vrot.slane %v2169_v50, %v2184_v56  ;;  %v773_v34 = vrot.slane %v2171_v51, %v2178_v37 }
 0x17d   : > { %v764_v47 = vsel %vm685_vm1, %v763_v27, %v759_v41 }
 0x17e   : > { %v2173_v54 = vpop.permute.xlu1 %635  ;;  %v2175_v36 = vpop.permute.xlu0 %629 }
 0x17f   : > { %v777_v29 = vrot.slane %v2173_v54, %v2181_v55  ;;  %v768_v31 = vrot.slane %v2175_v36, %v2187_v12 }
 0x181   : > { %v778_v28 = vsel %vm678_vm0, %v777_v29, %v773_v34  ;;  %v769_v50 = vsel %vm692_vm2, %v768_v31, %v764_v47 }
 0x182   : > { %v2189_v42 = vpop.permute.xlu1 %638  ;;  %v2191_v46 = vpop.permute.xlu0 %644 }
 0x183   : > { %v782_v32 = vrot.slane %v2189_v42, %v2184_v56  ;;  %v792_v43 = vrot.slane %v2191_v46, %v2178_v37 }
 0x185   : > { %v783_v51 = vsel %vm685_vm1, %v782_v32, %v778_v28 }
 0x186   : > { %v648_v1 = vpop.permute.xlu1 %647  ;;  %v642_v2 = vpop.permute.xlu0 %641 }
 0x187   : > { %v796_v24 = vrot.slane %v648_v1, %v2181_v55  ;;  %v787_v35 = vrot.slane %v642_v2, %v2187_v12 }
 0x189   : > { %v797_v52 = vsel %vm678_vm0, %v796_v24, %v792_v43  ;;  %v788_v53 = vsel %vm692_vm2, %v787_v35, %v783_v51 }
 0x18a   : > { %v651_v15 = vpop.permute.xlu1 %650  ;;  %v657_v16 = vpop.permute.xlu0 %656 }
 0x18b   : > { %v801_v38 = vrot.slane %v651_v15, %v2184_v56  ;;  %v811_v36 = vrot.slane %v657_v16, %v2178_v37 }
 0x18d   : > { %v802_v54 = vsel %vm685_vm1, %v801_v38, %v797_v52 }
 0x18e   : > { %v660_v39 = vpop.permute.xlu1 %659  ;;  %v654_v40 = vpop.permute.xlu0 %653 }
 0x18f   : > { %v806_v44 = vrot.slane %v654_v40, %v2187_v12  ;;  %v815_v48 = vrot.slane %v660_v39, %v2181_v55  ;;  %v832_v55 = vsel %vm831_vm5, %v750_v45, %v830_v30 }
 0x190   : > { %v834_v61 = vsel %vm833_vm6, %v769_v50, %v832_v55 }
 0x191   : > { %v807_v57 = vsel %vm692_vm2, %v806_v44, %v802_v54  ;;  %v816_v60 = vsel %vm678_vm0, %v815_v48, %v811_v36  ;;  %v836_v62 = vsel %vm835_vm7, %v788_v53, %v834_v61 }
 0x192   : > { %v663_v42 = vpop.permute.xlu1 %662  ;;  %v666_v46 = vpop.permute.xlu0 %665  ;;  %v838_v0 = vsel %vm837_vm8, %v807_v57, %v836_v62 }
 0x193   : > { %v820_v58 = vrot.slane %v663_v42, %v2184_v56  ;;  %v825_v59 = vrot.slane %v666_v46, %v2187_v12 }
 0x195   : > { %v821_v13 = vsel %vm685_vm1, %v820_v58, %v816_v60 }
 0x196   : > { %v826_v63 = vsel %vm692_vm2, %v825_v59, %v821_v13  ;;  %v854_v56 = vpop.permute.xlu0 %853  ;;  %v1059_v12 = vpop.permute.xlu1 %1058 }
 0x197   : > { %v840_v1 = vsel %vm839_vm9, %v826_v63, %v838_v0 }
 0x198   : > { %v843_v2 = vsel %vm842_vm10, %v840_v1, 0.0 }
 0x199   : > { %844 = vadd.xlane.f32.xlu1 %v843_v2 }
 0x19a   : > { %v866_v3 = vpop.permute.xlu0 %865  ;;  %v961_v4 = vpop.permute.xlu1 %960 }
 0x19e   : > { %v884_v5 = vpop.permute.xlu0 %883  ;;  %v1073_v6 = vpop.permute.xlu1 %1072 }
 0x1a2   : > { %v891_v7 = vpop.permute.xlu0 %890  ;;  %v968_v8 = vpop.permute.xlu1 %967 }
 0x1a6   : > { %v940_v9 = vpop.permute.xlu0 %939  ;;  %v2274_v10 = vpop.permute.xlu1 %1079 }
 0x1aa   : > { %v947_v11 = vpop.permute.xlu0 %946  ;;  %v2276_v17 = vpop.permute.xlu1 %974 }
 0x1ae   : > { %v996_v14 = vpop.permute.xlu0 %995  ;;  %v2278_v15 = vpop.permute.xlu1 %1086 }
 0x1b2   : > { %v1003_v16 = vpop.permute.xlu0 %1002  ;;  %v2280_v18 = vpop.permute.xlu1 %981 }
 0x1b6   : > { %v1052_v19 = vpop.permute.xlu0 %1051  ;;  %v2282_v21 = vpop.permute.xlu1 %1093 }
 0x1ba   : > { %v898_v23 = vpop.permute.xlu0 %897  ;;  %v2284_v25 = vpop.permute.xlu1 %988 }
 0x1be   : > { %v954_v20 = vpop.permute.xlu0 %953  ;;  %v2286_v27 = vpop.permute.xlu1 %1100 }
 0x1c2   : > { %v1010_v29 = vpop.permute.xlu0 %1009 }
 0x1c6   : > { %v1066_v32 = vpop.permute.xlu0 %1065 }
 0x1ca   : > { %v905_v38 = vpop.permute.xlu0 %904 }
 0x1ce   : > { %v1017_v41 = vpop.permute.xlu0 %1016 }
 0x1d2   : > { %v912_v47 = vpop.permute.xlu0 %911 }
 0x1d6   : > { %v1024_v50 = vpop.permute.xlu0 %1023 }
 0x1da   : > { %v919_v53 = vpop.permute.xlu0 %918 }
 0x1de   : > { %v1031_v46 = vpop.permute.xlu0 %1030 }
 0x1e2   : > { %v926_v59 = vpop.permute.xlu0 %925 }
 0x1e6   : > { %v1038_v62 = vpop.permute.xlu0 %1037 }
 0x1ea   : > { %v933_v2 = vpop.permute.xlu0 %932 }
 0x226   : > { %v845_v22 = vpop.xlane.xlu1 %844 }
 0x227   : > { %v856_v31 = vadd.f32 %v854_v56, %v845_v22 }
 0x229   : > { %vm857_vm11 = vcmp.gt.f32.partialorder %v856_v31, 0.0  ;;  %v868_v24 = vmul.f32 %v866_v3, %v856_v31 }
 0x22b   : > { %v2288_v33 = vsel %vm857_vm11, %v856_v31, %v868_v24 }
 0x22c   : > { %v1134_v34 = vmul.f32 %v884_v5, %v2288_v33  ;;  %v1135_v35 = vmul.f32 %v891_v7, %v2288_v33  ;;  %v1142_v39 = vmul.f32 %v940_v9, %v2288_v33  ;;  %v1143_v40 = vmul.f32 %v947_v11, %v2288_v33  ;;  %v1045_v5 = vpop.permute.xlu0 %1044  ;;  %v2335_v9 = vld [vmem:[%s2483_s6] ss:$0 sm:$0xff] }
 0x22d   : > { %v1150_v26 = vmul.f32 %v996_v14, %v2288_v33  ;;  %v1151_v43 = vmul.f32 %v1003_v16, %v2288_v33  ;;  %v1158_v44 = vmul.f32 %v1052_v19, %v2288_v33  ;;  %v1159_v45 = vmul.f32 %v1059_v12, %v2288_v33 }
 0x22e   : > { %1199 = vperm.xlu0 %1727, %v1134_v34   ;;  %1202 = vperm.xlu1 %1728, %v1135_v35   ;;  %v1136_v28 = vmul.f32 %v898_v23, %v2288_v33  ;;  %v1144_v48 = vmul.f32 %v954_v20, %v2288_v33  ;;  %v1152_v49 = vmul.f32 %v1010_v29, %v2288_v33 }
 0x22f   : > { %v1160_v51 = vmul.f32 %v1066_v32, %v2288_v33  ;;  %v1137_v52 = vmul.f32 %v905_v38, %v2288_v33  ;;  %v1145_v30 = vmul.f32 %v961_v4, %v2288_v33  ;;  %v1153_v54 = vmul.f32 %v1017_v41, %v2288_v33 }
 0x230   : > { %v1161_v36 = vmul.f32 %v1073_v6, %v2288_v33  ;;  %v1138_v42 = vmul.f32 %v912_v47, %v2288_v33  ;;  %v1146_v55 = vmul.f32 %v968_v8, %v2288_v33  ;;  %v1154_v57 = vmul.f32 %v1024_v50, %v2288_v33  ;;  %v1667_v8 = vld [vmem:[%s2482_s5] ss:$0 sm:$0xff] }
 0x231   : > { %v1162_v58 = vmul.f32 %v2274_v10, %v2288_v33  ;;  %v1139_v60 = vmul.f32 %v919_v53, %v2288_v33  ;;  %v1147_v61 = vmul.f32 %v2276_v17, %v2288_v33  ;;  %v1155_v13 = vmul.f32 %v1031_v46, %v2288_v33 }
 0x232   : > { %1223 = vperm.xlu0 %1727, %v1142_v39   ;;  %1226 = vperm.xlu1 %1728, %v1143_v40   ;;  %v1163_v63 = vmul.f32 %v2278_v15, %v2288_v33  ;;  %v1140_v0 = vmul.f32 %v926_v59, %v2288_v33  ;;  %v1148_v1 = vmul.f32 %v2280_v18, %v2288_v33 }
 0x233   : > { %v1156_v56 = vmul.f32 %v1038_v62, %v2288_v33  ;;  %v1164_v12 = vmul.f32 %v2282_v21, %v2288_v33  ;;  %v1141_v3 = vmul.f32 %v933_v2, %v2288_v33  ;;  %v1149_v4 = vmul.f32 %v2284_v25, %v2288_v33 }
 0x234   : > { %v1157_v6 = vmul.f32 %v1045_v5, %v2288_v33  ;;  %v1165_v7 = vmul.f32 %v2286_v27, %v2288_v33 }
 0x236   : > { %1247 = vperm.xlu0 %1727, %v1150_v26   ;;  %1250 = vperm.xlu1 %1728, %v1151_v43  }
 0x23a   : > { %1271 = vperm.xlu0 %1727, %v1158_v44   ;;  %1274 = vperm.xlu1 %1728, %v1159_v45  }
 0x23e   : > { %1205 = vperm.xlu0 %1727, %v1136_v28   ;;  %1229 = vperm.xlu1 %1728, %v1144_v48  }
 0x242   : > { %1253 = vperm.xlu0 %1727, %v1152_v49   ;;  %1277 = vperm.xlu1 %1728, %v1160_v51  }
 0x246   : > { %1208 = vperm.xlu0 %1727, %v1137_v52   ;;  %1232 = vperm.xlu1 %1728, %v1145_v30  }
 0x24a   : > { %1256 = vperm.xlu0 %1727, %v1153_v54   ;;  %1280 = vperm.xlu1 %1728, %v1161_v36  }
 0x24e   : > { %1211 = vperm.xlu0 %1727, %v1138_v42   ;;  %1235 = vperm.xlu1 %1728, %v1146_v55  }
 0x252   : > { %1259 = vperm.xlu0 %1727, %v1154_v57   ;;  %1283 = vperm.xlu1 %1728, %v1162_v58  }
 0x256   : > { %1214 = vperm.xlu0 %1727, %v1139_v60   ;;  %1238 = vperm.xlu1 %1728, %v1147_v61  }
 0x25a   : > { %1262 = vperm.xlu0 %1727, %v1155_v13   ;;  %1286 = vperm.xlu1 %1728, %v1163_v63  }
 0x25e   : > { %1217 = vperm.xlu0 %1727, %v1140_v0   ;;  %1241 = vperm.xlu1 %1728, %v1148_v1  }
 0x262   : > { %1265 = vperm.xlu0 %1727, %v1156_v56   ;;  %1289 = vperm.xlu1 %1728, %v1164_v12  }
 0x266   : > { %1220 = vperm.xlu0 %1727, %v1141_v3   ;;  %1244 = vperm.xlu1 %1728, %v1149_v4  }
 0x26a   : > { %1268 = vperm.xlu0 %1727, %v1157_v6   ;;  %1292 = vperm.xlu1 %1728, %v1165_v7  }
 0x26e   : > { %1478 = vbcast.lane.b32.xlu0 %v1667_v8, 264  ;;  %1474 = vbcast.lane.b32.xlu1 %v1667_v8, 256 }
 0x272   : > { %1507 = vbcast.lane.b32.xlu0 %v2335_v9, 256  ;;  %1482 = vbcast.lane.b32.xlu1 %v1667_v8, 272 }
 0x276   : > { %1486 = vbcast.lane.b32.xlu1 %v1667_v8, 280 }
 0x27a   : > { %1511 = vbcast.lane.b32.xlu1 %v2335_v9, 264 }
 0x2ad   : > { %v1200_v10 = vpop.permute.xlu0 %1199  ;;  %v1203_v11 = vpop.permute.xlu1 %1202 }
 0x2ae   : > { %v1301_v26 = vrot.slane %v1203_v11, %v2178_v37  ;;  %v1297_v41 = vrot.slane %v1200_v10, %v2178_v37 }
 0x2b0   : > { %v1422_v54 = vsel %vm827_vm3, %v1301_v26, %v1297_v41 }
 0x2b1   : > { %v1224_v17 = vpop.permute.xlu0 %1223  ;;  %v1227_v14 = vpop.permute.xlu1 %1226 }
 0x2b2   : > { %v1333_v43 = vrot.slane %v1227_v14, %v2178_v37  ;;  %v1329_v44 = vrot.slane %v1224_v17, %v2178_v37 }
 0x2b4   : > { %v1429_v46 = vsel %vm827_vm3, %v1333_v43, %v1329_v44 }
 0x2b5   : > { %v1248_v15 = vpop.permute.xlu0 %1247  ;;  %v1251_v16 = vpop.permute.xlu1 %1250 }
 0x2b6   : > { %v1365_v45 = vrot.slane %v1251_v16, %v2178_v37  ;;  %v1361_v47 = vrot.slane %v1248_v15, %v2178_v37 }
 0x2b8   : > { %v1436_v55 = vsel %vm827_vm3, %v1365_v45, %v1361_v47 }
 0x2b9   : > { %v1272_v18 = vpop.permute.xlu0 %1271  ;;  %v1275_v19 = vpop.permute.xlu1 %1274 }
 0x2ba   : > { %v1397_v48 = vrot.slane %v1275_v19, %v2178_v37  ;;  %v1393_v49 = vrot.slane %v1272_v18, %v2178_v37 }
 0x2bc   : > { %v1443_v60 = vsel %vm827_vm3, %v1397_v48, %v1393_v49 }
 0x2bd   : > { %v1206_v21 = vpop.permute.xlu0 %1205  ;;  %v1230_v23 = vpop.permute.xlu1 %1229 }
 0x2be   : > { %v1337_v50 = vrot.slane %v1230_v23, %v2178_v37  ;;  %v1305_v51 = vrot.slane %v1206_v21, %v2178_v37 }
 0x2c0   : > { %v1430_v61 = vsel %vm829_vm4, %v1337_v50, %v1429_v46  ;;  %v1423_v13 = vsel %vm829_vm4, %v1305_v51, %v1422_v54 }
 0x2c1   : > { %v1254_v25 = vpop.permute.xlu0 %1253  ;;  %v1278_v20 = vpop.permute.xlu1 %1277 }
 0x2c2   : > { %v1401_v30 = vrot.slane %v1278_v20, %v2178_v37  ;;  %v1369_v53 = vrot.slane %v1254_v25, %v2178_v37 }
 0x2c4   : > { %v1444_v0 = vsel %vm829_vm4, %v1401_v30, %v1443_v60  ;;  %v1437_v1 = vsel %vm829_vm4, %v1369_v53, %v1436_v55 }
 0x2c5   : > { %v1209_v27 = vpop.permute.xlu0 %1208  ;;  %v1233_v29 = vpop.permute.xlu1 %1232 }
 0x2c6   : > { %v1341_v36 = vrot.slane %v1233_v29, %v2178_v37  ;;  %v1309_v42 = vrot.slane %v1209_v27, %v2178_v37 }
 0x2c8   : > { %v1431_v12 = vsel %vm831_vm5, %v1341_v36, %v1430_v61  ;;  %v1424_v3 = vsel %vm831_vm5, %v1309_v42, %v1423_v13 }
 0x2c9   : > { %v1257_v22 = vpop.permute.xlu0 %1256  ;;  %v2339_v31 = vpop.permute.xlu1 %1280 }
 0x2ca   : > { %v1373_v4 = vrot.slane %v1257_v22, %v2178_v37  ;;  %v1405_v6 = vrot.slane %v2339_v31, %v2178_v37 }
 0x2cc   : > { %v1438_v20 = vsel %vm831_vm5, %v1373_v4, %v1437_v1 }
 0x2cd   : > { %v1212_v32 = vpop.permute.xlu0 %1211  ;;  %v1236_v24 = vpop.permute.xlu1 %1235 }
 0x2ce   : > { %v1345_v57 = vrot.slane %v1236_v24, %v2178_v37  ;;  %v1313_v58 = vrot.slane %v1212_v32, %v2178_v37 }
 0x2d0   : > { %v1432_v7 = vsel %vm833_vm6, %v1345_v57, %v1431_v12  ;;  %v1425_v8 = vsel %vm833_vm6, %v1313_v58, %v1424_v3 }
 0x2d1   : > { %v1260_v33 = vpop.permute.xlu0 %1259  ;;  %v2341_v34 = vpop.permute.xlu1 %1283 }
 0x2d2   : > { %v1377_v10 = vrot.slane %v1260_v33, %v2178_v37  ;;  %v1409_v17 = vrot.slane %v2341_v34, %v2178_v37 }
 0x2d4   : > { %v1439_v31 = vsel %vm833_vm6, %v1377_v10, %v1438_v20  ;;  %v1731_v10 = vld [vmem:[%s1992_s15 + $0x10] sm:$0xff] }
 0x2d5   : > { %v1215_v35 = vpop.permute.xlu0 %1214  ;;  %v1239_v38 = vpop.permute.xlu1 %1238 }
 0x2d6   : > { %v1317_v62 = vrot.slane %v1215_v35, %v2178_v37  ;;  %v1349_v2 = vrot.slane %v1239_v38, %v2178_v37  ;;  %v1445_v35 = vsel %vm831_vm5, %v1405_v6, %v1444_v0 }
 0x2d7   : > { %v1446_v41 = vsel %vm833_vm6, %v1409_v17, %v1445_v35  ;;  %v1732_v17 = vld [vmem:[%s1992_s15 + $0x18] sm:$0xff] }
 0x2d8   : > { %v1426_v14 = vsel %vm835_vm7, %v1317_v62, %v1425_v8  ;;  %v1433_v19 = vsel %vm835_vm7, %v1349_v2, %v1432_v7  ;;  %v1730_v7 = vld [vmem:[%s1992_s15 + $0x8] sm:$0xff] }
 0x2d9   : > { %v2343_v39 = vpop.permute.xlu0 %1262  ;;  %v2345_v40 = vpop.permute.xlu1 %1286 }
 0x2da   : > { %v1381_v15 = vrot.slane %v2343_v39, %v2178_v37  ;;  %v1413_v27 = vrot.slane %v2345_v40, %v2178_v37 }
 0x2dc   : > { %v1440_v38 = vsel %vm835_vm7, %v1381_v15, %v1439_v31  ;;  %v1447_v45 = vsel %vm835_vm7, %v1413_v27, %v1446_v41  ;;  %v1736_v27 = vld [vmem:[%s1992_s15 + $0x28] sm:$0xff] }
 0x2dd   : > { %v1218_v28 = vpop.permute.xlu0 %1217  ;;  %v1242_v52 = vpop.permute.xlu1 %1241 }
 0x2de   : > { %v1321_v56 = vrot.slane %v1218_v28, %v2178_v37  ;;  %v1353_v5 = vrot.slane %v1242_v52, %v2178_v37 }
 0x2e0   : > { %v1427_v25 = vsel %vm837_vm8, %v1321_v56, %v1426_v14  ;;  %v1434_v29 = vsel %vm837_vm8, %v1353_v5, %v1433_v19  ;;  %v1729_v5 = vld [vmem:[%s1992_s15] sm:$0xff]  ;;  %v1734_v19 = vld [vmem:[%s1992_s15 + $0x38] sm:$0xff] }
 0x2e1   : > { %v1266_v59 = vpop.permute.xlu0 %1265  ;;  %v1290_v63 = vpop.permute.xlu1 %1289 }
 0x2e2   : > { %v1385_v21 = vrot.slane %v1266_v59, %v2178_v37  ;;  %v1417_v32 = vrot.slane %v1290_v63, %v2178_v37 }
 0x2e4   : > { %v1441_v44 = vsel %vm837_vm8, %v1385_v21, %v1440_v38  ;;  %v1448_v48 = vsel %vm837_vm8, %v1417_v32, %v1447_v45 }
 0x2e5   : > { %v1221_v11 = vpop.permute.xlu0 %1220  ;;  %v1245_v16 = vpop.permute.xlu1 %1244 }
 0x2e6   : > { %v1325_v18 = vrot.slane %v1221_v11, %v2178_v37  ;;  %v1357_v23 = vrot.slane %v1245_v16, %v2178_v37  ;;  %v1733_v16 = vld [vmem:[%s1992_s15 + $0x30] sm:$0xff] }
 0x2e8   : > { %v1428_v22 = vsel %vm839_vm9, %v1325_v18, %v1427_v25  ;;  %v1435_v33 = vsel %vm839_vm9, %v1357_v23, %v1434_v29  ;;  %v1735_v25 = vld [vmem:[%s1992_s15 + $0x20] sm:$0xff] }
 0x2e9   : > { %v1269_v24 = vpop.permute.xlu0 %1268  ;;  %v1455_v34 = vsel %vm1454_vm12, %v1428_v22, 0.0  ;;  %v1293_v39 = vpop.permute.xlu1 %1292  ;;  %v1458_v26 = vsel %vm1454_vm12, %v1435_v33, 0.0 }
 0x2ea   : > { %v1389_v40 = vrot.slane %v1269_v24, %v2178_v37  ;;  %1456 = vadd.xlane.f32.xlu0 %v1455_v34  ;;  %v1421_v43 = vrot.slane %v1293_v39, %v2178_v37  ;;  %1459 = vadd.xlane.f32.xlu1 %v1458_v26 }
 0x2ec   : > { %v1442_v47 = vsel %vm839_vm9, %v1389_v40, %v1441_v44  ;;  %v1449_v49 = vsel %vm839_vm9, %v1421_v43, %v1448_v48 }
 0x2ed   : > { %v1461_v28 = vsel %vm1454_vm12, %v1442_v47, 0.0  ;;  %v1464_v50 = vsel %vm1454_vm12, %v1449_v49, 0.0  ;;  %v1475_v37 = vpop.permute.xlu1 %1474  ;;  %v1479_v52 = vpop.permute.xlu0 %1478 }
 0x2ee   : > { %1462 = vadd.xlane.f32.xlu0 %v1461_v28 }
 0x2f1   : > { %v1483_v51 = vpop.permute.xlu1 %1482  ;;  %v1508_v53 = vpop.permute.xlu0 %1507 }
 0x2f2   : > { %1465 = vadd.xlane.f32.xlu0 %v1464_v50 }
 0x2f5   : > { %v1487_v30 = vpop.permute.xlu1 %1486 }
 0x2f9   : > { %v1512_v54 = vpop.permute.xlu1 %1511 }
 0x2fb   : > { %1519 = vbcast.lane.b32.xlu1 %v2335_v9, 280 }
 0x308   : > { %1515 = vbcast.lane.b32.xlu0 %v2335_v9, 272 }
 0x377   : > { %v1457_v36 = vpop.xlane.xlu0 %1456  ;;  %v1460_v42 = vpop.xlane.xlu1 %1459 }
 0x378   : > { %v1492_v46 = vadd.f32 %v1475_v37, %v1457_v36  ;;  %v1493_v55 = vadd.f32 %v1479_v52, %v1460_v42 }
 0x37a   : > { %vm1496_vm13 = vcmp.gt.f32.partialorder %v1492_v46, 0.0  ;;  %v1525_v57 = vmul.f32 %v1508_v53, %v1492_v46  ;;  %vm1497_vm14 = vcmp.gt.f32.partialorder %v1493_v55, 0.0  ;;  %v1526_v58 = vmul.f32 %v1512_v54, %v1493_v55 }
 0x37b   : > { %v1463_v59 = vpop.xlane.xlu0 %1462  ;;  %v1520_v13 = vpop.permute.xlu1 %1519 }
 0x37c   : > { %v1529_v60 = vsel %vm1496_vm13, %v1492_v46, %v1525_v57  ;;  %v1530_v61 = vsel %vm1497_vm14, %v1493_v55, %v1526_v58  ;;  %v1494_v63 = vadd.f32 %v1483_v51, %v1463_v59 }
 0x37d   : > { %1535 = vperm.xlu0 %1727, %v1529_v60   ;;  %1540 = vperm.xlu1 %1728, %v1530_v61  }
 0x37e   : > { %vm1498_vm0 = vcmp.gt.f32.partialorder %v1494_v63, 0.0 }
 0x37f   : > { %v1466_v9 = vpop.xlane.xlu0 %1465 }
 0x380   : > { %v1495_v62 = vadd.f32 %v1487_v30, %v1466_v9 }
 0x382   : > { %vm1499_vm15 = vcmp.gt.f32.partialorder %v1495_v62, 0.0  ;;  %v1528_v0 = vmul.f32 %v1520_v13, %v1495_v62 }
 0x383   : > { %v1516_v1 = vpop.permute.xlu0 %1515 }
 0x384   : > { %v1527_v2 = vmul.f32 %v1516_v1, %v1494_v63  ;;  %v1532_v56 = vsel %vm1499_vm15, %v1495_v62, %v1528_v0 }
 0x385   : > { %1550 = vperm.xlu1 %1728, %v1532_v56  }
 0x386   : > { %v1531_v12 = vsel %vm1498_vm0, %v1494_v63, %v1527_v2 }
 0x387   : > { %1545 = vperm.xlu0 %1727, %v1531_v12  }
 0x3fc   : > { %v1536_v3 = vpop.permute.xlu0 %1535  ;;  %v1541_v4 = vpop.permute.xlu1 %1540 }
 0x3fd   : > { %v1553_v6 = vmul.f32 %v1729_v5, %v1536_v3  ;;  %v1554_v8 = vmul.f32 %v1730_v7, %v1536_v3  ;;  %v1555_v11 = vmul.f32 %v1731_v10, %v1541_v4  ;;  %v1556_v14 = vmul.f32 %v1732_v17, %v1541_v4 }
 0x3ff   : > { %1561 = vst [vmem:[%s296_s9] sm:$0xff] %v1553_v6  ;;  %1562 = vst [vmem:[%s296_s9 + $0x8] sm:$0xff] %v1554_v8 }
 0x400   : > { %1563 = vst [vmem:[%s296_s9 + $0x10] sm:$0xff] %v1555_v11  ;;  %1564 = vst [vmem:[%s296_s9 + $0x18] sm:$0xff] %v1556_v14 }
 0x404   : > { %v1551_v15 = vpop.permute.xlu1 %1550 }
 0x405   : > { %v1559_v18 = vmul.f32 %v1733_v16, %v1551_v15  ;;  %v1560_v21 = vmul.f32 %v1734_v19, %v1551_v15 }
 0x406   : > { %v1546_v23 = vpop.permute.xlu0 %1545 }
 0x407   : > { %1567 = vst [vmem:[%s296_s9 + $0x30] sm:$0xff] %v1559_v18  ;;  %1568 = vst [vmem:[%s296_s9 + $0x38] sm:$0xff] %v1560_v21  ;;  %v1557_v20 = vmul.f32 %v1735_v25, %v1546_v23  ;;  %v1558_v29 = vmul.f32 %v1736_v27, %v1546_v23 }
 0x409   : > { %1565 = vst [vmem:[%s296_s9 + $0x20] sm:$0xff] %v1557_v20  ;;  %1566 = vst [vmem:[%s296_s9 + $0x28] sm:$0xff] %v1558_v29 }
 0x40a   : > { %1780 = shalt.err (!%p1777_p2)
}
 0x40b   : > { %s1781_s15 = scalar_lea.hbm %s2431_s12, 1024  ;;  %s1785_s9 = scalar_lea.hbm %s2484_s7, 2048 }
 0x40c   : > { %p1782_p4 = scmp.ne.s32.totalorder %s2431_s12, %s1781_s15  ;;  %p1786_p9 = scmp.lt.u32.totalorder %s2431_s12, %s2484_s7 }
 0x40d   : > { %p1787_p1 = scmp.lt.u32.totalorder %s1785_s9, %s1781_s15  ;;  %p1789_p6 = scmp.lt.u32.totalorder %s1781_s15, %s2431_s12 }
 0x40e   : > { %p1783_p5 = pnand %p1782_p4, %p2491_p11 }
 0x40f   : > { %p1788_p3 = por %p1787_p1, %p1786_p9 }
 0x410   : > { %p1784_p7 = pneg %p1783_p5 }
 0x411   : > { %p1790_p12 = por %p1789_p6, %p1788_p3 }
 0x413   : > { %p1791_p13 = pnand %p1790_p12, %p1784_p7 }
 0x415   : > { %1794 = shalt.err (!%p1791_p13)
}
 0x416   : > { %s1840_s18 = smov 256   ;;  %s1841_s20 = smov 16  }
 0x417   : > { %1678 = dma.vmem_to_hbm [thread:$0]  (%p2491_p11), %s2424_s8, 1024, %s2431_s12, %s1570_s28, %s1840_s18, %s1840_s18, %s1841_s20  }
 0x418 PF: > { %s1598_s22 = sand.u32 1, %s1821_s24   ;;  %p2492_p8 = scmp.ne.s32.totalorder %s2489_s14, 0 }
 0x419   : > { %p2493_p10 = scmp.ge.s32.totalorder %s1833_s27, 2  ;;  %s1599_s23 = scalar_lea.sflag [#allocation4], %s1598_s22 }
 0x41b   : > { %p1685_p0 = pnand %p2493_p10, %p2492_p8 }
 0x41d   : > { %1816 = dma.done.wait (!%p1685_p0), %s1599_s23, 1024  }
 0x41e   : > { %1818 = vsyncadd (!%p1685_p0), %s1599_s23, 4294966272  ;;  %p20_p2 = scmp.ge.s32.totalorder %s1907_s30, 4   ;;  %s2494_s24 = smov %s1825_s25 }
 0x41f   : > { %s2495_s25 = smov %s1829_s26  ;;  %s2496_s26 = smov %s1919_s10 }
 0x420   : > { %s2497_s27 = smov %s1907_s30  ;;  %22 = sbr.rel (!%p20_p2) target bundleno = 5 (0x5), region = 93 }
 0x427   :  { %1604 = vsyncpa [#allocation3], 1 }
 0x428   :  { %1606 = vsyncpa [#allocation3 + $0x1], 1 }
 0x429   :  { %1607 = vsyncpa [#allocation4], 1 }
 0x42a   :  { %1609 = vsyncpa [#allocation4 + $0x1], 1 }

</bundles_post_ra>
